<compile_context>
chip_gen: v7x
topology: tpu7x:2x2x1
jax: 0.10.0
libtpu: 0.0.40
codegen_flags: <defaults>
</compile_context>

<pallas_src>
import functools

import jax
import jax.numpy as jnp
from jax import lax
from jax.experimental import pallas as pl
from jax.experimental.pallas import tpu as pltpu


_BLOCK_CAP_ROWS = 2048   # fixed batch-tile cap: f32 x-tile 1 MiB, 2x-buffered << scoped VMEM (v7x-safe)


def _round_up(x: int, m: int) -> int:
    return ((x + m - 1) // m) * m


def _min_sublane(dtype) -> int:
    """Minimum row-tile so the (sublane, lane) tiling constraint is met."""
    return {4: 8, 2: 16, 1: 32}.get(jnp.dtype(dtype).itemsize, 8)


def _fused_mlp_kernel(*refs, row_chunk: int):
    """refs = (x_ref, w0_ref, b0_ref, w1_ref, b1_ref, ..., o_ref).

    x_ref: (TB, D_in)          w_l: (D_l, D_{l+1}) resident in VMEM
    b_l:   (1, D_{l+1}) f32    o_ref: (TB, D_out)
    """
    x_ref, o_ref = refs[0], refs[-1]
    wb = refs[1:-1]
    num_layers = len(wb) // 2

    # Hoisted: weights/biases loaded into vregs ONCE per grid step (not per chunk).
    ws = [wb[2 * l][...] for l in range(num_layers)]
    bs = [wb[2 * l + 1][...] for l in range(num_layers)]

    def run_layers(h):
        for w, b in zip(ws, bs):
            # Cast activations to the weight dtype (bf16 fast path on the MXU),
            # accumulate in f32; bias + ReLU stay f32 on the VPU (v5e-safe).
            y = jnp.dot(h.astype(w.dtype), w, preferred_element_type=jnp.float32)
            h = jnp.maximum(y + b, 0.0)
        return h

    tb = x_ref.shape[0]

    if tb <= row_chunk:
        # Small tile: single full-tile load / compute / store.
        o_ref[...] = run_layers(x_ref[...]).astype(o_ref.dtype)
    else:
        # Large tile: chunk rows so intermediates stay in a bounded vreg set.
        n_chunks = tb // row_chunk  # tb is a multiple of row_chunk by construction

        def body(c, carry):
            r0 = pl.multiple_of(c * row_chunk, row_chunk)
            h = run_layers(x_ref[pl.ds(r0, row_chunk), :])
            o_ref[pl.ds(r0, row_chunk), :] = h.astype(o_ref.dtype)
            return carry

        unroll = True if n_chunks <= 8 else 4
        lax.fori_loop(0, n_chunks, body, 0, unroll=unroll)


def mlp_forward(x, weights_t, biases_2d, *, block_batch=None, out_dtype=None):
    """Fused y = ReLU(...ReLU(x @ W0 + b0)... @ WL + bL) in one pallas_call.

    x:          (B, D_in)
    weights_t:  list of (D_l, D_{l+1}) arrays (pre-transposed PyTorch weights,
                pre-cast to the compute dtype)
    biases_2d:  list of (1, D_{l+1}) float32 arrays
    """
    B, d_in = x.shape
    num_layers = len(weights_t)
    assert num_layers >= 1 and len(biases_2d) == num_layers
    assert weights_t[0].shape[0] == d_in
    d_out = weights_t[-1].shape[1]
    out_dtype = out_dtype if out_dtype is not None else x.dtype

    compute_bf16 = weights_t[0].dtype == jnp.bfloat16
    row_chunk = 256 if compute_bf16 else 128       # bounds vreg pressure (f32 tighter)
    min_rows = _min_sublane(x.dtype)

    # ---- batch tile: fixed cap, >=2 grid steps when B is big enough (v7x dual-TC),
    #      NO wrapper-side padding (cdiv grid, OOB handled by Pallas) ----
    if block_batch is None:
        if B < 64:
            bb = _round_up(max(B, min_rows), min_rows)              # tiny: 1 step
        elif B <= row_chunk:
            bb = _round_up(pl.cdiv(B, 2), min_rows)                 # 2 steps
        else:
            bb = min(_BLOCK_CAP_ROWS, _round_up(pl.cdiv(B, 2), row_chunk))
    else:
        bb = _round_up(max(int(block_batch), min_rows), min_rows)
        if bb > row_chunk:
            bb = _round_up(bb, row_chunk)
        bb = min(bb, _BLOCK_CAP_ROWS)

    nb = pl.cdiv(B, bb)

    # ---- specs: x is batch-tiled; every weight/bias is a resident full block ----
    in_specs = [pl.BlockSpec((bb, d_in), lambda i: (i, 0))]
    flat_params = []
    for w_t, b2 in zip(weights_t, biases_2d):
        in_specs.append(pl.BlockSpec(w_t.shape, lambda i: (0, 0)))
        in_specs.append(pl.BlockSpec(b2.shape, lambda i: (0, 0)))
        flat_params.extend((w_t, b2))

    out_specs = pl.BlockSpec((bb, d_out), lambda i: (i, 0))

    kernel = functools.partial(_fused_mlp_kernel, row_chunk=row_chunk)
    return pl.pallas_call(
        kernel,
        out_shape=jax.ShapeDtypeStruct((B, d_out), out_dtype),
        grid_spec=pltpu.PrefetchScalarGridSpec(
            num_scalar_prefetch=0,
            grid=(nb,),
            in_specs=in_specs,
            out_specs=out_specs,
        ),
        compiler_params=pltpu.CompilerParams(
            dimension_semantics=("parallel",),  # batch axis shards across v7x's 2 TCs
        ),
    )(x, *flat_params)


class AntennaEncoder:
    """JAX/Pallas port of AntennaEncoderModule: [Linear -> activation] x L.

    The PyTorch module takes an activation class; ReLU is used here.
    compute_dtype=bfloat16 is the fast MXU-operand path (accumulation stays f32).
    """

    def __init__(self, sensor_samples_size=128, dims_hidden=(64, 32), *,
                 compute_dtype=jnp.float32, key=None):
        if key is None:
            key = jax.random.PRNGKey(42)
        dims = [sensor_samples_size] + list(dims_hidden)

        self.weights = []     # PyTorch layout (out, in), f32 — kept for the reference
        self.biases = []      # (out,), f32
        self.weights_t = []   # pre-transposed (in, out), pre-cast to compute dtype
        self.biases_2d = []   # (1, out), f32 (bias + ReLU run in f32 on the VPU)

        for i in range(len(dims) - 1):
            key, kw, kb = jax.random.split(key, 3)
            bound = float(dims[i]) ** -0.5  # PyTorch nn.Linear default init
            w = jax.random.uniform(kw, (dims[i + 1], dims[i]), jnp.float32,
                                   -bound, bound)
            b = jax.random.uniform(kb, (dims[i + 1],), jnp.float32, -bound, bound)
            self.weights.append(w)
            self.biases.append(b)
            self.weights_t.append(jnp.transpose(w).astype(compute_dtype))
            self.biases_2d.append(b.reshape(1, -1).astype(jnp.float32))

    def __call__(self, x, *, block_batch=None):
        return mlp_forward(x, self.weights_t, self.biases_2d,
                           block_batch=block_batch, out_dtype=jnp.float32)


def _reference(x, weights, biases):
    h = x
    for w, b in zip(weights, biases):
        h = jnp.maximum(h @ w.T + b, 0.0)
    return h


if __name__ == "__main__":
    batch = 8
    sensor_samples_size = 128
    dims_hidden = [64, 32]

    x = jax.random.normal(jax.random.PRNGKey(0), (batch, sensor_samples_size),
                          jnp.float32)

    # --- f32 compute path: exact vs pure-JAX reference ---
    enc = AntennaEncoder(sensor_samples_size, dims_hidden,
                         compute_dtype=jnp.float32, key=jax.random.PRNGKey(1))
    latent = jax.block_until_ready(enc(x))
    ref = _reference(x, enc.weights, enc.biases)
    assert latent.shape == (batch, dims_hidden[-1])
    assert jnp.allclose(latent, ref, atol=1e-5, rtol=1e-5)

    # --- bf16 MXU-operand path (fast path on v5e/v6e/v7x): looser tolerance ---
    enc_bf16 = AntennaEncoder(sensor_samples_size, dims_hidden,
                              compute_dtype=jnp.bfloat16,
                              key=jax.random.PRNGKey(1))
    latent_bf16 = jax.block_until_ready(enc_bf16(x))
    assert latent_bf16.shape == (batch, dims_hidden[-1])
    assert jnp.allclose(latent_bf16, ref, atol=2e-2, rtol=2e-2)

    # --- odd batch: exercises the non-divisible last block (no wrapper pad/slice),
    #     the 2-step grid (v7x dual-TC), and in-kernel row chunking ---
    x_big = jax.random.normal(jax.random.PRNGKey(2),
                              (600, sensor_samples_size), jnp.float32)
    latent_big = jax.block_until_ready(enc(x_big))
    ref_big = _reference(x_big, enc.weights, enc.biases)
    assert latent_big.shape == (600, dims_hidden[-1])
    assert jnp.allclose(latent_big, ref_big, atol=1e-4, rtol=1e-4)

    print("KERNEL_OK")
</pallas_src>

<mosaic_0001>
module attributes {stable_mosaic.version = 11 : i64} {
  func.func @_fused_mlp_kernel(%arg0: i32, %arg1: memref<8x128xf32, #tpu.memory_space<vmem>>, %arg2: memref<128x64xf32, #tpu.memory_space<vmem>>, %arg3: memref<1x64xf32, #tpu.memory_space<vmem>>, %arg4: memref<64x32xf32, #tpu.memory_space<vmem>>, %arg5: memref<1x32xf32, #tpu.memory_space<vmem>>, %arg6: memref<8x32xf32, #tpu.memory_space<vmem>>) attributes {dimension_semantics = [#tpu.dimension_semantics<parallel>], iteration_bounds = array<i64: 1>, scalar_prefetch = 0 : i64, scratch_operands = 0 : i64, tpu.core_type = #tpu.core_type<tc>, window_params = [{transform_indices = @transform_0, window_bounds = array<i64: 8, 128>}, {pipeline_mode = #tpu.pipeline_mode<synchronous>, transform_indices = @transform_1, window_bounds = array<i64: 128, 64>}, {pipeline_mode = #tpu.pipeline_mode<synchronous>, transform_indices = @transform_2, window_bounds = array<i64: 1, 64>}, {pipeline_mode = #tpu.pipeline_mode<synchronous>, transform_indices = @transform_3, window_bounds = array<i64: 64, 32>}, {pipeline_mode = #tpu.pipeline_mode<synchronous>, transform_indices = @transform_4, window_bounds = array<i64: 1, 32>}, {transform_indices = @transform_5, window_bounds = array<i64: 8, 32>}]} {
    %c0 = arith.constant 0 : index
    %c0_0 = arith.constant 0 : index
    %0 = vector.load %arg2[%c0, %c0_0] : memref<128x64xf32, #tpu.memory_space<vmem>>, vector<128x64xf32>
    %c0_1 = arith.constant 0 : index
    %c0_2 = arith.constant 0 : index
    %1 = vector.load %arg4[%c0_1, %c0_2] : memref<64x32xf32, #tpu.memory_space<vmem>>, vector<64x32xf32>
    %c0_3 = arith.constant 0 : index
    %c0_4 = arith.constant 0 : index
    %2 = vector.load %arg3[%c0_3, %c0_4] : memref<1x64xf32, #tpu.memory_space<vmem>>, vector<1x64xf32>
    %c0_5 = arith.constant 0 : index
    %c0_6 = arith.constant 0 : index
    %3 = vector.load %arg5[%c0_5, %c0_6] : memref<1x32xf32, #tpu.memory_space<vmem>>, vector<1x32xf32>
    %c0_7 = arith.constant 0 : index
    %c0_8 = arith.constant 0 : index
    %4 = vector.load %arg1[%c0_7, %c0_8] : memref<8x128xf32, #tpu.memory_space<vmem>>, vector<8x128xf32>
    %cst = arith.constant dense<0.000000e+00> : vector<8x64xf32>
    %5 = tpu.matmul %4, %0, %cst {dimension_numbers = #tpu.dot_dimension_numbers<[1], [0], [0], [1], [0, 0, 1, 1], [], []>} : vector<8x128xf32>, vector<128x64xf32>, vector<8x64xf32> -> vector<8x64xf32>
    %6 = vector.broadcast %2 : vector<1x64xf32> to vector<8x64xf32>
    %7 = arith.addf %5, %6 : vector<8x64xf32>
    %cst_9 = arith.constant 0.000000e+00 : f32
    %8 = vector.broadcast %cst_9 : f32 to vector<8x64xf32>
    %9 = arith.maximumf %7, %8 : vector<8x64xf32>
    %cst_10 = arith.constant dense<0.000000e+00> : vector<8x32xf32>
    %10 = tpu.matmul %9, %1, %cst_10 {dimension_numbers = #tpu.dot_dimension_numbers<[1], [0], [0], [1], [0, 0, 1, 1], [], []>} : vector<8x64xf32>, vector<64x32xf32>, vector<8x32xf32> -> vector<8x32xf32>
    %11 = vector.broadcast %3 : vector<1x32xf32> to vector<8x32xf32>
    %12 = arith.addf %10, %11 : vector<8x32xf32>
    %cst_11 = arith.constant 0.000000e+00 : f32
    %13 = vector.broadcast %cst_11 : f32 to vector<8x32xf32>
    %14 = arith.maximumf %12, %13 : vector<8x32xf32>
    %c0_12 = arith.constant 0 : index
    %c0_13 = arith.constant 0 : index
    %15 = vector.load %arg6[%c0_12, %c0_13] : memref<8x32xf32, #tpu.memory_space<vmem>>, vector<8x32xf32>
    tpu.vector_store %arg6[%c0_12, %c0_13], %14 {strides = array<i32>} : memref<8x32xf32, #tpu.memory_space<vmem>>, vector<8x32xf32>,
    return
  }
  func.func @transform_0(%arg0: i32) -> (i32, i32) {
    %c0_i32 = arith.constant 0 : i32
    %c0_i32_0 = arith.constant 0 : i32
    return %arg0, %c0_i32 : i32, i32
  }
  func.func @transform_1(%arg0: i32) -> (i32, i32) {
    %c0_i32 = arith.constant 0 : i32
    %c0_i32_0 = arith.constant 0 : i32
    %c0_i32_1 = arith.constant 0 : i32
    return %c0_i32, %c0_i32_0 : i32, i32
  }
  func.func @transform_2(%arg0: i32) -> (i32, i32) {
    %c0_i32 = arith.constant 0 : i32
    %c0_i32_0 = arith.constant 0 : i32
    %c0_i32_1 = arith.constant 0 : i32
    return %c0_i32, %c0_i32_0 : i32, i32
  }
  func.func @transform_3(%arg0: i32) -> (i32, i32) {
    %c0_i32 = arith.constant 0 : i32
    %c0_i32_0 = arith.constant 0 : i32
    %c0_i32_1 = arith.constant 0 : i32
    return %c0_i32, %c0_i32_0 : i32, i32
  }
  func.func @transform_4(%arg0: i32) -> (i32, i32) {
    %c0_i32 = arith.constant 0 : i32
    %c0_i32_0 = arith.constant 0 : i32
    %c0_i32_1 = arith.constant 0 : i32
    return %c0_i32, %c0_i32_0 : i32, i32
  }
  func.func @transform_5(%arg0: i32) -> (i32, i32) {
    %c0_i32 = arith.constant 0 : i32
    %c0_i32_0 = arith.constant 0 : i32
    return %arg0, %c0_i32 : i32, i32
  }
}

</mosaic_0001>

<bundles_post_ra>
// kernel: tpu_custom_call.1
= control target key start
LH: loop header
LB: loop body
LE: loop exit
PB: predicated region body
PF: predicated region fallthrough
CT: control target
= control target key end

     0   :  { %v369_v3 = vmov 0.0|0.0   ;;  %vm370_vm0 = vmmov 0   ;;  %v371_v6 = vmov 0.0   ;;  %s496_s0 = inlined_call_operand.vmem [shape: f32[8,128], index: 0, kind: input, shape index: {}]   ;;  %s497_s1 = inlined_call_operand.vmem [shape: f32[128,64], index: 1, kind: input, shape index: {}]   ;;  %s498_s2 = inlined_call_operand.vmem [shape: f32[1,64], index: 2, kind: input, shape index: {}]   ;;  %s499_s3 = inlined_call_operand.vmem [shape: f32[64,32], index: 3, kind: input, shape index: {}]   ;;  %s500_s4 = inlined_call_operand.vmem [shape: f32[1,32], index: 4, kind: input, shape index: {}]   ;;  %s501_s5 = inlined_call_operand.hbm [shape: f32[8,32], index: 5, kind: output, shape index: {}]  }
   0x1   :  { %v21_v0 = vld [vmem:[%s497_s1] sm:$0xff]  ;;  %v22_v1 = vld [vmem:[%s497_s1 + $0x8] sm:$0xff]  ;;  %v23_v2 = vld [vmem:[%s497_s1 + $0x10] sm:$0xff]  ;;  %305 = vmatprep.subr.bf16.mxu0 %v369_v3  ;;  %283 = vmatprep.mubr.msk.f32.mxu0 %vm370_vm0, %v371_v6 }
   0x2   :  { %v306_v4 = vpack.c.bf16 %v22_v1, %v21_v0  ;;  %v24_v5 = vld [vmem:[%s497_s1 + $0x18] sm:$0xff]  ;;  %329 = vmatprep.subr.bf16.mxu1 %v369_v3  ;;  %302 = vmatprep.mubr.msk.f32.mxu1 %vm370_vm0, %v371_v6  ;;  %v25_v8 = vld [vmem:[%s497_s1 + $0x20] sm:$0xff]  ;;  %v26_v9 = vld [vmem:[%s497_s1 + $0x28] sm:$0xff] }
   0x3   :  { %v309_v7 = vpack.c.bf16 %v24_v5, %v23_v2  ;;  %v37_v10 = vld [vmem:[%s499_s3] sm:$0xff]  ;;  %v38_v11 = vld [vmem:[%s499_s3 + $0x8] sm:$0xff]  ;;  %v39_v12 = vld [vmem:[%s499_s3 + $0x10] sm:$0xff]  ;;  %v312_v14 = vpack.c.bf16 %v26_v9, %v25_v8 }
   0x4   :  { %307 = vmatpush3.bf16.msra.mxu0 %v306_v4  ;;  %v40_v13 = vld [vmem:[%s499_s3 + $0x18] sm:$0xff]  ;;  %v330_v15 = vpack.c.bf16 %v38_v11, %v37_v10  ;;  %v27_v16 = vld [vmem:[%s497_s1 + $0x30] sm:$0xff] }
   0x5   :  { %308 = vmatprep.subr.bf16.mxu0 %v369_v3  ;;  %v28_v17 = vld [vmem:[%s497_s1 + $0x38] sm:$0xff] }
   0x8   :  { %310 = vmatpush3.bf16.msra.mxu0 %v309_v7 }
   0x9   :  { %311 = vmatprep.subr.bf16.mxu0 %v369_v3 }
   0xa   :  { %10 = vsyncpa [#allocation3], 0  ;;  %331 = vmatpush3.bf16.msra.mxu1 %v330_v15  ;;  %v333_v18 = vpack.c.bf16 %v40_v13, %v39_v12  ;;  %v41_v19 = vld [vmem:[%s499_s3 + $0x20] sm:$0xff]  ;;  %v42_v20 = vld [vmem:[%s499_s3 + $0x28] sm:$0xff]  ;;  %v315_v21 = vpack.c.bf16 %v28_v17, %v27_v16  ;;  %vm131_vm1 = vcmask 523264   ;;  %s372_s20 = smov [#allocation2]  }
   0xb   :  { %332 = vmatprep.subr.bf16.mxu1 %v369_v3  ;;  %v29_v22 = vld [vmem:[%s497_s1 + $0x40] sm:$0xff]  ;;  %v30_v23 = vld [vmem:[%s497_s1 + $0x48] sm:$0xff]  ;;  %v336_v24 = vpack.c.bf16 %v42_v20, %v41_v19  ;;  %v31_v26 = vld [vmem:[%s497_s1 + $0x50] sm:$0xff]  ;;  %s214_s21 = sshll.u32 %s372_s20, 4  ;;  %vm206_vm2 = vcmask 261120   ;;  %s215_s21 = int_to_ptr.vmem [resolvable:$true] %s214_s21 }
   0xc   :  { %313 = vmatpush3.bf16.msra.mxu0 %v312_v14  ;;  %v318_v25 = vpack.c.bf16 %v30_v23, %v29_v22  ;;  %v32_v27 = vld [vmem:[%s497_s1 + $0x58] sm:$0xff]  ;;  %v33_v29 = vld [vmem:[%s497_s1 + $0x60] sm:$0xff]  ;;  %v34_v30 = vld [vmem:[%s497_s1 + $0x68] sm:$0xff]  ;;  %p350_p1 = scmp.lt.s32.totalorder %s215_s21, %s215_s21 }
   0xd   :  { %314 = vmatprep.subr.bf16.mxu0 %v369_v3  ;;  %v321_v28 = vpack.c.bf16 %v32_v27, %v31_v26  ;;  %v324_v31 = vpack.c.bf16 %v34_v30, %v33_v29  ;;  %v35_v32 = vld [vmem:[%s497_s1 + $0x70] sm:$0xff]  ;;  %v36_v33 = vld [vmem:[%s497_s1 + $0x78] sm:$0xff]  ;;  %v47_v35 = vld [vmem:[%s496_s0] sm:$0xff] }
   0xe   :  { %334 = vmatpush3.bf16.msra.mxu1 %v333_v18  ;;  %v327_v34 = vpack.c.bf16 %v36_v33, %v35_v32  ;;  %v43_v36 = vld [vmem:[%s499_s3 + $0x30] sm:$0xff]  ;;  %v44_v37 = vld [vmem:[%s499_s3 + $0x38] sm:$0xff]  ;;  %v222_v39 = vld [vmem:[%s498_s2] ss:$0 sm:$0xff]  ;;  %s345_s2 = scalar_lea.vmem %s215_s21, 128 }
   0xf   :  { %335 = vmatprep.subr.bf16.mxu1 %v369_v3  ;;  %v339_v38 = vpack.c.bf16 %v44_v37, %v43_v36  ;;  %v223_v44 = vld [vmem:[%s500_s4] ss:$0 sm:$0xff]  ;;  %p346_p0 = scmp.ne.s32.totalorder %s215_s21, %s345_s2  ;;  %p351_p2 = scmp.lt.s32.totalorder %s345_s2, %s345_s2 }
  0x10   :  { %316 = vmatpush3.bf16.msra.mxu0 %v315_v21 }
  0x11   :  { %317 = vmatprep.subr.bf16.mxu0 %v369_v3  ;;  %p352_p3 = por %p351_p2, %p350_p1 }
  0x12   :  { %337 = vmatpush3.bf16.msra.mxu1 %v336_v24 }
  0x13   :  { %338 = vmatprep.subr.bf16.mxu1 %v369_v3  ;;  %p353_p4 = pnand %p352_p3, %p346_p0 }
  0x14   :  { %319 = vmatpush3.bf16.msra.mxu0 %v318_v25 }
  0x15   :  { %320 = vmatprep.subr.bf16.mxu0 %v369_v3 }
  0x16   :  { %340 = vmatpush3.bf16.msra.mxu1 %v339_v38 }
  0x18   :  { %322 = vmatpush3.bf16.msra.mxu0 %v321_v28 }
  0x19   :  { %323 = vmatprep.subr.bf16.mxu0 %v369_v3 }
  0x1c   :  { %325 = vmatpush3.bf16.msra.mxu0 %v324_v31 }
  0x1d   :  { %326 = vmatprep.subr.bf16.mxu0 %v369_v3 }
  0x20   :  { %328 = vmatpush3.bf16.msra.mxu0 %v327_v34 }
  0x23   :  { %284 = vmatmul.mubr.f32.vlgmr.msra.gmra.mrb[0].mxu0 %v47_v35 }
  0xf6   :  { %v120_v40 = vpop.f32.mrb[0].mxu0 }
  0xf7   :  { %v121_v41 = vadd.f32 %v222_v39, %v120_v40  ;;  %v285_v42 = vpop.f32.mrb[1].mxu0 }
  0xf9   :  { %v124_v43 = vmax.f32 %v121_v41, 0.0 }
  0xfb   :  { %303 = vmatmul.mubr.msk.f32.vlgmr.msra.gmra.mrb[0].mxu1 %vm131_vm1, %v124_v43 }
 0x1ce   :  { %v201_v45 = vpop.f32.mrb[0].mxu1 }
 0x1cf   :  { %v202_v46 = vadd.f32 %v223_v44, %v201_v45  ;;  %v304_v47 = vpop.f32.mrb[1].mxu1 }
 0x1d1   :  { %v205_v48 = vmax.f32 %v202_v46, 0.0 }
 0x1d3   :  { %207 = vst.msk [vmem:[#allocation2] sm:$0xff] %vm206_vm2, %v205_v48 }
 0x1d4   :  { %356 = shalt.err (!%p353_p4)
}
 0x1d5   :  { %s357_s4 = scalar_lea.hbm %s501_s5, 128 }
 0x1d6   :  { %p358_p5 = scmp.ne.s32.totalorder %s501_s5, %s357_s4  ;;  %p361_p6 = scmp.lt.u32.totalorder %s357_s4, %s501_s5 }
 0x1d8   :  { %p363_p7 = pnand %p361_p6, %p358_p5 }
 0x1da   :  { %366 = shalt.err (!%p363_p7)
}
 0x1db   :  { %217 = dma.vmem_to_hbm [thread:$0]  %s215_s21, 128, %s501_s5, [#allocation3]  }
 0x1dc   :  { %367 = dma.done.wait [#allocation3], 128  }
 0x1dd   :  { %368 = vsyncadd [#allocation3], 4294967168 }
 0x1de   :  { %221 = vsyncpa [#allocation3], 1 }

</bundles_post_ra>
